<compile_context>
chip_gen: v6e
topology: v6e:2x2x1
jax: 0.10.0
libtpu: 0.0.40
codegen_flags: <defaults>
</compile_context>

<pallas_src>
import jax
import jax.numpy as jnp
from jax.experimental import pallas as pl
from jax.experimental.pallas import tpu as pltpu

_EPS = 1e-5


def _normact_kernel(x_ref, gamma_ref, beta_ref, o_ref):
    # x_ref: (N, tile_C, L)   gamma_ref / beta_ref: (1, tile_C, 1)
    x = x_ref[...].astype(jnp.float32)
    n_elems = x_ref.shape[0] * x_ref.shape[2]
    inv_count = 1.0 / float(n_elems)

    # Per-channel batch statistics: reduce over lanes (L) first, then over the
    # leading batch dim.  Biased variance, clamped against catastrophic
    # cancellation in E[x^2] - mean^2.
    sum_l = jnp.sum(x, axis=2, keepdims=True)           # (N, tc, 1)
    sumsq_l = jnp.sum(x * x, axis=2, keepdims=True)     # (N, tc, 1)
    mean = jnp.sum(sum_l, axis=0, keepdims=True) * inv_count    # (1, tc, 1)
    meansq = jnp.sum(sumsq_l, axis=0, keepdims=True) * inv_count
    var = jnp.maximum(meansq - mean * mean, 0.0)
    inv = jax.lax.rsqrt(var + _EPS)                      # (1, tc, 1)

    # Fold the affine: y = x * scale + shift  (2 VALU ops per element).
    scale = gamma_ref[...].astype(jnp.float32) * inv
    shift = beta_ref[...].astype(jnp.float32) - mean * scale
    y = x * scale + shift

    o_ref[...] = jnp.maximum(y, 0.0).astype(o_ref.dtype)


def _pick_tile_c(N, C, L, itemsize, budget_bytes=2 * 1024 * 1024):
    """Largest channel tile (multiple of 8, dividing C) whose block fits budget."""
    if C % 8 != 0:
        # Ragged / tiny channel count: take the full extent (legal block shape).
        return C
    per_chan_bytes = max(N * L * itemsize, 1)
    tc = max(8, (budget_bytes // per_chan_bytes) // 8 * 8)
    tc = min(tc, C)
    while C % tc != 0:        # keep an exact grid; terminates at tc == 8
        tc -= 8
    return tc


def norm_act(x, gamma, beta):
    """x: (N, C, L) float32.  gamma, beta: (C,) float32.  Returns (N, C, L)."""
    N, C, L = x.shape
    itemsize = jnp.dtype(x.dtype).itemsize
    tc = _pick_tile_c(N, C, L, itemsize)
    grid = (C // tc,)

    g3 = gamma.reshape(1, C, 1).astype(x.dtype)
    b3 = beta.reshape(1, C, 1).astype(x.dtype)

    cost = pl.CostEstimate(
        flops=8 * N * C * L,
        transcendentals=C,                       # one rsqrt per channel
        bytes_accessed=2 * N * C * L * itemsize + 2 * C * itemsize,
    )

    return pl.pallas_call(
        _normact_kernel,
        out_shape=jax.ShapeDtypeStruct((N, C, L), x.dtype),
        grid=grid,
        in_specs=[
            pl.BlockSpec((N, tc, L), lambda c: (0, c, 0)),
            pl.BlockSpec((1, tc, 1), lambda c: (0, c, 0)),
            pl.BlockSpec((1, tc, 1), lambda c: (0, c, 0)),
        ],
        out_specs=pl.BlockSpec((N, tc, L), lambda c: (0, c, 0)),
        compiler_params=pltpu.CompilerParams(
            dimension_semantics=("parallel",),
        ),
        cost_estimate=cost,
    )(x, g3, b3)


def _reference(x, gamma, beta):
    # Pure-JAX reference matching training-mode BatchNorm1d + ReLU.
    mean = jnp.mean(x, axis=(0, 2), keepdims=True)
    var = jnp.mean((x - mean) ** 2, axis=(0, 2), keepdims=True)
    y = (x - mean) / jnp.sqrt(var + _EPS)
    y = y * gamma[None, :, None] + beta[None, :, None]
    return jnp.maximum(y, 0.0)


if __name__ == "__main__":
    key = jax.random.PRNGKey(0)
    N, C, L = 2, 4, 16
    kx, _, _ = jax.random.split(key, 3)
    x = jax.random.normal(kx, (N, C, L), dtype=jnp.float32)
    # Deterministic "parameters" (BatchNorm1d affine weight/bias, shape (C,)).
    gamma = 1.0 + 0.1 * jnp.arange(C, dtype=jnp.float32)
    beta = 0.05 * jnp.arange(C, dtype=jnp.float32) - 0.1

    out = norm_act(x, gamma, beta)
    jax.block_until_ready(out)

    ref = _reference(x, gamma, beta)
    assert out.shape == (N, C, L)
    assert jnp.allclose(out, ref, atol=1e-4, rtol=1e-4), "mismatch vs reference"
    print("KERNEL_OK")
</pallas_src>

<mosaic_0001>
module attributes {stable_mosaic.version = 11 : i64} {
  func.func @_normact_kernel(%arg0: i32, %arg1: memref<2x4x16xf32, #tpu.memory_space<vmem>>, %arg2: memref<1x4x1xf32, #tpu.memory_space<vmem>>, %arg3: memref<1x4x1xf32, #tpu.memory_space<vmem>>, %arg4: memref<2x4x16xf32, #tpu.memory_space<vmem>>) attributes {dimension_semantics = [#tpu.dimension_semantics<parallel>], iteration_bounds = array<i64: 1>, scalar_prefetch = 0 : i64, scratch_operands = 0 : i64, tpu.core_type = #tpu.core_type<tc>, window_params = [{transform_indices = @transform_0, window_bounds = array<i64: 2, 4, 16>}, {transform_indices = @transform_1, window_bounds = array<i64: 1, 4, 1>}, {transform_indices = @transform_2, window_bounds = array<i64: 1, 4, 1>}, {transform_indices = @transform_3, window_bounds = array<i64: 2, 4, 16>}]} {
    %c0 = arith.constant 0 : index
    %c0_0 = arith.constant 0 : index
    %c0_1 = arith.constant 0 : index
    %0 = vector.load %arg1[%c0, %c0_0, %c0_1] : memref<2x4x16xf32, #tpu.memory_space<vmem>>, vector<2x4x16xf32>
    %cst = arith.constant dense<0.000000e+00> : vector<2x4xf32>
    %1 = vector.multi_reduction <add>, %0, %cst [2] : vector<2x4x16xf32> to vector<2x4xf32>
    %2 = vector.shape_cast %1 : vector<2x4xf32> to vector<2x4x1xf32>
    %3 = arith.mulf %0, %0 : vector<2x4x16xf32>
    %cst_2 = arith.constant dense<0.000000e+00> : vector<2x4xf32>
    %4 = vector.multi_reduction <add>, %3, %cst_2 [2] : vector<2x4x16xf32> to vector<2x4xf32>
    %5 = vector.shape_cast %4 : vector<2x4xf32> to vector<2x4x1xf32>
    %cst_3 = arith.constant dense<0.000000e+00> : vector<4x1xf32>
    %6 = vector.multi_reduction <add>, %2, %cst_3 [0] : vector<2x4x1xf32> to vector<4x1xf32>
    %7 = vector.shape_cast %6 : vector<4x1xf32> to vector<1x4x1xf32>
    %cst_4 = arith.constant 3.125000e-02 : f32
    %8 = vector.broadcast %cst_4 : f32 to vector<1x4x1xf32>
    %9 = arith.mulf %7, %8 : vector<1x4x1xf32>
    %cst_5 = arith.constant dense<0.000000e+00> : vector<4x1xf32>
    %10 = vector.multi_reduction <add>, %5, %cst_5 [0] : vector<2x4x1xf32> to vector<4x1xf32>
    %11 = vector.shape_cast %10 : vector<4x1xf32> to vector<1x4x1xf32>
    %cst_6 = arith.constant 3.125000e-02 : f32
    %12 = vector.broadcast %cst_6 : f32 to vector<1x4x1xf32>
    %13 = arith.mulf %11, %12 : vector<1x4x1xf32>
    %14 = arith.mulf %9, %9 : vector<1x4x1xf32>
    %15 = arith.subf %13, %14 : vector<1x4x1xf32>
    %cst_7 = arith.constant 0.000000e+00 : f32
    %16 = vector.broadcast %cst_7 : f32 to vector<1x4x1xf32>
    %17 = arith.maximumf %15, %16 : vector<1x4x1xf32>
    %cst_8 = arith.constant 9.99999974E-6 : f32
    %18 = vector.broadcast %cst_8 : f32 to vector<1x4x1xf32>
    %19 = arith.addf %17, %18 : vector<1x4x1xf32>
    %20 = math.rsqrt %19 : vector<1x4x1xf32>
    %c0_9 = arith.constant 0 : index
    %c0_10 = arith.constant 0 : index
    %c0_11 = arith.constant 0 : index
    %21 = vector.load %arg2[%c0_9, %c0_10, %c0_11] : memref<1x4x1xf32, #tpu.memory_space<vmem>>, vector<1x4x1xf32>
    %22 = arith.mulf %21, %20 : vector<1x4x1xf32>
    %c0_12 = arith.constant 0 : index
    %c0_13 = arith.constant 0 : index
    %c0_14 = arith.constant 0 : index
    %23 = vector.load %arg3[%c0_12, %c0_13, %c0_14] : memref<1x4x1xf32, #tpu.memory_space<vmem>>, vector<1x4x1xf32>
    %24 = arith.mulf %9, %22 : vector<1x4x1xf32>
    %25 = arith.subf %23, %24 : vector<1x4x1xf32>
    %26 = vector.broadcast %22 : vector<1x4x1xf32> to vector<2x4x16xf32>
    %27 = arith.mulf %0, %26 : vector<2x4x16xf32>
    %28 = vector.broadcast %25 : vector<1x4x1xf32> to vector<2x4x16xf32>
    %29 = arith.addf %27, %28 : vector<2x4x16xf32>
    %cst_15 = arith.constant 0.000000e+00 : f32
    %30 = vector.broadcast %cst_15 : f32 to vector<2x4x16xf32>
    %31 = arith.maximumf %29, %30 : vector<2x4x16xf32>
    %c0_16 = arith.constant 0 : index
    %c0_17 = arith.constant 0 : index
    %c0_18 = arith.constant 0 : index
    %32 = vector.load %arg4[%c0_16, %c0_17, %c0_18] : memref<2x4x16xf32, #tpu.memory_space<vmem>>, vector<2x4x16xf32>
    tpu.vector_store %arg4[%c0_16, %c0_17, %c0_18], %31 {strides = array<i32>} : memref<2x4x16xf32, #tpu.memory_space<vmem>>, vector<2x4x16xf32>,
    return
  }
  func.func @transform_0(%arg0: i32) -> (i32, i32, i32) {
    %c0_i32 = arith.constant 0 : i32
    %c0_i32_0 = arith.constant 0 : i32
    %c0_i32_1 = arith.constant 0 : i32
    return %c0_i32, %arg0, %c0_i32_0 : i32, i32, i32
  }
  func.func @transform_1(%arg0: i32) -> (i32, i32, i32) {
    %c0_i32 = arith.constant 0 : i32
    %c0_i32_0 = arith.constant 0 : i32
    %c0_i32_1 = arith.constant 0 : i32
    return %c0_i32, %arg0, %c0_i32_0 : i32, i32, i32
  }
  func.func @transform_2(%arg0: i32) -> (i32, i32, i32) {
    %c0_i32 = arith.constant 0 : i32
    %c0_i32_0 = arith.constant 0 : i32
    %c0_i32_1 = arith.constant 0 : i32
    return %c0_i32, %arg0, %c0_i32_0 : i32, i32, i32
  }
  func.func @transform_3(%arg0: i32) -> (i32, i32, i32) {
    %c0_i32 = arith.constant 0 : i32
    %c0_i32_0 = arith.constant 0 : i32
    %c0_i32_1 = arith.constant 0 : i32
    return %c0_i32, %arg0, %c0_i32_0 : i32, i32, i32
  }
}

</mosaic_0001>

<bundles_post_ra>
// kernel: tpu_custom_call.1
= control target key start
LH: loop header
LB: loop body
LE: loop exit
PB: predicated region body
PF: predicated region fallthrough
CT: control target
= control target key end

     0   :  { %vm17_vm0 = vcmask 125952   ;;  %s160_s0 = inlined_call_operand.vmem [shape: f32[2,4,16], index: 0, kind: input, shape index: {}]   ;;  %s161_s1 = inlined_call_operand.vmem [shape: f32[1,4,1], index: 1, kind: input, shape index: {}]   ;;  %s162_s2 = inlined_call_operand.vmem [shape: f32[1,4,1], index: 2, kind: input, shape index: {}]   ;;  %s163_s3 = inlined_call_operand.hbm [shape: f32[2,4,16], index: 3, kind: output, shape index: {}]  }
   0x1   :  { %v15_v0 = vld [vmem:[%s160_s0] sm:$0xf]  ;;  %v16_v1 = vld [vmem:[%s160_s0 + $0x4] sm:$0xf] }
   0x2   :  { %v18_v2 = vsel %vm17_vm0, %v15_v0, 0.0  ;;  %v24_v3 = vmul.f32 %v15_v0, %v15_v0  ;;  %v25_v4 = vmul.f32 %v16_v1, %v16_v1 }
   0x3   :  { %8 = vsyncpa [#allocation3], 0  ;;  %19 = vadd.xlane.f32.xlu0 %v18_v2  ;;  %v21_v6 = vsel %vm17_vm0, %v16_v1, 0.0  ;;  %v115_v8 = vmov 0   ;;  %vm32_vm1 = vcmask 1043456   ;;  %s116_s19 = smov [#allocation2]  }
   0x4   :  { %v26_v5 = vsel %vm17_vm0, %v24_v3, 0.0  ;;  %v29_v7 = vsel %vm17_vm0, %v25_v4, 0.0  ;;  %89 = vset.pattern.permute.xlu0 %v115_v8  ;;  %90 = vset.pattern.permute.xlu1 %v115_v8  ;;  %v46_v25 = vld [vmem:[%s161_s1] sm:$0xf]  ;;  %s74_s20 = sshll.u32 %s116_s19, 4  ;;  %s75_s20 = int_to_ptr.vmem [resolvable:$true] %s74_s20 }
   0x5   :  { %27 = vadd.xlane.f32.xlu1 %v26_v5  ;;  %v48_v28 = vld [vmem:[%s162_s2] sm:$0xf]  ;;  %s93_s1 = scalar_lea.vmem %s75_s20, 128  ;;  %p98_p1 = scmp.lt.s32.totalorder %s75_s20, %s75_s20 }
   0x6   :  { %p94_p0 = scmp.ne.s32.totalorder %s75_s20, %s93_s1  ;;  %p99_p2 = scmp.lt.s32.totalorder %s93_s1, %s93_s1 }
   0x7   :  { %22 = vadd.xlane.f32.xlu0 %v21_v6 }
   0x8   :  { %p100_p3 = por %p99_p2, %p98_p1 }
   0x9   :  { %30 = vadd.xlane.f32.xlu1 %v29_v7 }
   0xa   :  { %p101_p4 = pnand %p100_p3, %p94_p0 }
  0x8c   :  { %v20_v9 = vpop.xlane.xlu0 %19 }
  0x8d   :  { %v33_v12 = vsel %vm32_vm1, %v20_v9, 0.0 }
  0x8e   :  { %v28_v10 = vpop.xlane.xlu1 %27 }
  0x8f   :  { %v37_v16 = vsel %vm32_vm1, %v28_v10, 0.0 }
  0x90   :  { %v23_v11 = vpop.xlane.xlu0 %22 }
  0x91   :  { %v34_v13 = vsel %vm32_vm1, %v23_v11, 0.0 }
  0x92   :  { %v35_v14 = vadd.f32 %v34_v13, %v33_v12  ;;  %v31_v15 = vpop.xlane.xlu1 %30 }
  0x93   :  { %v38_v17 = vsel %vm32_vm1, %v31_v15, 0.0 }
  0x94   :  { %v36_v18 = vmul.f32 0.03125, %v35_v14  ;;  %v39_v19 = vadd.f32 %v38_v17, %v37_v16 }
  0x96   :  { %v41_v20 = vmul.f32 %v36_v18, %v36_v18  ;;  %v40_v21 = vmul.f32 0.03125, %v39_v19 }
  0x98   :  { %v42_v22 = vsub.f32 %v40_v21, %v41_v20 }
  0x9a   :  { %v43_v23 = vmax.f32 %v42_v22, 0.0 }
  0x9c   :  { %v44_v24 = vadd.f32 1e-05, %v43_v23 }
  0x9e   :  { %91 = vrsqrt.f32 %v44_v24 }
  0xab   :  { %v92_v26 = vpop.eup %91 }
  0xac   :  { %v47_v27 = vmul.f32 %v92_v26, %v46_v25 }
  0xae   :  { %53 = vperm.xlu0 %89, %v47_v27   ;;  %v49_v29 = vmul.f32 %v47_v27, %v36_v18 }
  0xb0   :  { %v50_v30 = vsub.f32 %v48_v28, %v49_v29 }
  0xb2   :  { %60 = vperm.xlu1 %90, %v50_v30  }
 0x129   :  { %v54_v31 = vpop.permute.xlu0 %53 }
 0x12a   :  { %v56_v32 = vmul.f32 %v54_v31, %v15_v0  ;;  %v57_v33 = vmul.f32 %v54_v31, %v16_v1 }
 0x12d   :  { %v61_v34 = vpop.permute.xlu1 %60 }
 0x12e   :  { %v63_v35 = vadd.f32 %v61_v34, %v56_v32  ;;  %v64_v36 = vadd.f32 %v61_v34, %v57_v33 }
 0x130   :  { %v65_v37 = vmax.f32 %v63_v35, 0.0  ;;  %v66_v38 = vmax.f32 %v64_v36, 0.0 }
 0x132   :  { %67 = vst.msk [vmem:[#allocation2] sm:$0xf] %vm17_vm0, %v65_v37  ;;  %68 = vst.msk [vmem:[#allocation2 + $0x4] sm:$0xf] %vm17_vm0, %v66_v38 }
 0x133   :  { %104 = shalt.err (!%p101_p4)
}
 0x134   :  { %s117_s2 = smov 64   ;;  %s118_s21 = smov 4  }
 0x135   :  { %80 = dma.vmem_to_hbm [thread:$0]  %s75_s20, 128, %s163_s3, [#allocation3], %s117_s2, %s117_s2, %s118_s21  }
 0x136   :  { %113 = dma.done.wait [#allocation3], 128  }
 0x137   :  { %114 = vsyncadd [#allocation3], 4294967168 }
 0x138   :  { %84 = vsyncpa [#allocation3], 1 }

</bundles_post_ra>
